<compile_context>
chip_gen: v5e
topology: v5e:2x2
jax: 0.10.0
libtpu: 0.0.40
codegen_flags: <defaults>
</compile_context>

<pallas_src>
import math

import numpy as np
import jax
import jax.numpy as jnp
from jax import lax
from jax.experimental import pallas as pl
from jax.experimental.pallas import tpu as pltpu


def _round_up(x, m):
    return ((x + m - 1) // m) * m


def _lcm(a, b):
    return a * b // math.gcd(a, b)


def _tile(dim, pref, align):
    """Largest tile <= pref that divides dim (dim assumed a multiple of align)."""
    if dim <= pref:
        return dim
    t = pref
    while dim % t:
        t -= align
    return max(t, align)


_VMEM_LIMIT_CACHE = None


def _vmem_limit():
    """Per-generation VMEM cap: ~96 MiB on v5e/v6e (128 MiB phys), ~48 MiB on v7x."""
    global _VMEM_LIMIT_CACHE
    if _VMEM_LIMIT_CACHE is None:
        try:
            cap = int(pltpu.get_tpu_info().vmem_capacity_bytes)
        except Exception:
            cap = 128 * 1024 * 1024
        _VMEM_LIMIT_CACHE = int(min((cap * 3) // 4, 100 * 1024 * 1024))
    return _VMEM_LIMIT_CACHE


# ---------------------------------------------------------------------------
# Kernel 1: tiled matmul + bias  (hoisted x @ w_ih of every layer, bf16 output)
# ---------------------------------------------------------------------------
def _matmul_bias_kernel(x_ref, w_ref, b_ref, o_ref, acc_ref):
    k = pl.program_id(2)

    @pl.when(k == 0)
    def _():
        acc_ref[...] = jnp.zeros_like(acc_ref)

    acc_ref[...] += jnp.dot(x_ref[...], w_ref[...],
                            preferred_element_type=jnp.float32)

    @pl.when(k == pl.num_programs(2) - 1)
    def _():
        # bias added in f32, then cast (bf16 when out_dtype is bf16)
        o_ref[...] = (acc_ref[...] + b_ref[...]).astype(o_ref.dtype)


def matmul_bias(x, w, b, *, out_dtype=jnp.bfloat16):
    M, K = x.shape
    _, N = w.shape
    tm = _tile(M, 256, 8)
    tn = _tile(N, 512, 128)
    tk = _tile(K, 512, 128)
    return pl.pallas_call(
        _matmul_bias_kernel,
        out_shape=jax.ShapeDtypeStruct((M, N), out_dtype),
        grid_spec=pltpu.PrefetchScalarGridSpec(
            num_scalar_prefetch=0,
            grid=(M // tm, N // tn, K // tk),
            in_specs=[
                pl.BlockSpec((tm, tk), lambda i, j, k: (i, k)),
                pl.BlockSpec((tk, tn), lambda i, j, k: (k, j)),
                pl.BlockSpec((1, tn), lambda i, j, k: (0, j)),
            ],
            out_specs=pl.BlockSpec((tm, tn), lambda i, j, k: (i, j)),
            scratch_shapes=[pltpu.VMEM((tm, tn), jnp.float32)],
        ),
        compiler_params=pltpu.CompilerParams(
            dimension_semantics=("parallel", "parallel", "arbitrary"),
            vmem_limit_bytes=_vmem_limit(),
        ),
    )(x, w, b)


# ---------------------------------------------------------------------------
# Kernel 2: time-chunked LSTM recurrence
#   - w_hh lives in HBM (pl.ANY), copied ONCE into a single-buffered VMEM scratch
#   - pack/pad mask (t < lengths[b]) fused into the h_out store
# ---------------------------------------------------------------------------
def make_lstm_layer_kernel(Tc, Hp):
    def kernel(gx_ref, w_hh_hbm, len_ref, h_out_ref, w_sc, h_sc, c_sc, dma_sem):
        c = pl.program_id(0)

        @pl.when(c == 0)
        def _():
            h_sc[...] = jnp.zeros_like(h_sc)
            c_sc[...] = jnp.zeros_like(c_sc)
            cp = pltpu.make_async_copy(w_hh_hbm, w_sc, dma_sem)
            cp.start()
            cp.wait()

        lens = len_ref[...]                               # (Bp, 1) int32

        def step(s, carry):
            gates = gx_ref[s] + jnp.dot(                  # (Bp, 4Hp) f32
                h_sc[...].astype(w_sc.dtype), w_sc[...],
                preferred_element_type=jnp.float32)
            # PyTorch gate order i, f, g, o; each gate block is 128-lane aligned.
            i_g = jax.nn.sigmoid(gates[:, 0 * Hp:1 * Hp])
            f_g = jax.nn.sigmoid(gates[:, 1 * Hp:2 * Hp])
            g_g = jnp.tanh(gates[:, 2 * Hp:3 * Hp])
            o_g = jax.nn.sigmoid(gates[:, 3 * Hp:4 * Hp])
            c_new = f_g * c_sc[...] + i_g * g_g
            h_new = o_g * jnp.tanh(c_new)
            c_sc[...] = c_new
            h_sc[...] = h_new                             # carried state: unmasked
            t = c * Tc + s
            mask = (lens > t).astype(jnp.float32)         # (Bp, 1)
            h_out_ref[s] = (h_new * mask).astype(h_out_ref.dtype)
            return carry

        lax.fori_loop(0, Tc, step, 0, unroll=min(8, Tc))

    return kernel


def lstm_layer(gx_tm, w_hh, len_col, *, Tc):
    Tp, Bp, G = gx_tm.shape
    Hp = G // 4
    # TODO(synk): on v7x with large batch, add a leading batch-split "parallel"
    # grid axis so both TensorCores run half the batch of the recurrence.
    return pl.pallas_call(
        make_lstm_layer_kernel(Tc, Hp),
        out_shape=jax.ShapeDtypeStruct((Tp, Bp, Hp), jnp.bfloat16),
        grid_spec=pltpu.PrefetchScalarGridSpec(
            num_scalar_prefetch=0,
            grid=(Tp // Tc,),
            in_specs=[
                pl.BlockSpec((Tc, Bp, G), lambda c: (c, 0, 0)),
                pl.BlockSpec(memory_space=pl.ANY),        # w_hh stays in HBM
                pl.BlockSpec((Bp, 1), lambda c: (0, 0)),  # lengths (full array)
            ],
            out_specs=pl.BlockSpec((Tc, Bp, Hp), lambda c: (c, 0, 0)),
            scratch_shapes=[
                pltpu.VMEM((Hp, G), jnp.bfloat16),        # single-buffered w_hh
                pltpu.VMEM((Bp, Hp), jnp.float32),        # h state (persists)
                pltpu.VMEM((Bp, Hp), jnp.float32),        # c state
                pltpu.SemaphoreType.DMA(()),
            ],
        ),
        compiler_params=pltpu.CompilerParams(
            dimension_semantics=("arbitrary",),           # time is a recurrence
            vmem_limit_bytes=_vmem_limit(),
        ),
    )(gx_tm, w_hh, len_col)


# ---------------------------------------------------------------------------
# Kernel 3a: vocab-tiled Linear + bias -> logits, with online logsumexp per row
# ---------------------------------------------------------------------------
def make_logits_lse_kernel(V, tv):
    def kernel(h_ref, w_ref, b_ref, logits_ref, lse_ref, acc_ref, m_ref, l_ref):
        j = pl.program_id(1)
        k = pl.program_id(2)

        @pl.when(k == 0)
        def _():
            acc_ref[...] = jnp.zeros_like(acc_ref)

            @pl.when(j == 0)
            def _():
                m_ref[...] = jnp.full(m_ref.shape, -jnp.inf, m_ref.dtype)
                l_ref[...] = jnp.zeros_like(l_ref)

        acc_ref[...] += jnp.dot(h_ref[...], w_ref[...],
                                preferred_element_type=jnp.float32)

        @pl.when(k == pl.num_programs(2) - 1)
        def _():
            logits = acc_ref[...] + b_ref[...]                    # (tm, tv) f32
            col = lax.broadcasted_iota(jnp.int32, logits.shape, 1) + j * tv
            logits = jnp.where(col < V, logits, -1e30)            # mask pad vocab
            logits_ref[...] = logits
            blk_max = jnp.max(logits, axis=-1, keepdims=True)
            m_new = jnp.maximum(m_ref[...], blk_max)
            l_ref[...] = (l_ref[...] * jnp.exp(m_ref[...] - m_new)
                          + jnp.sum(jnp.exp(logits - m_new), axis=-1, keepdims=True))
            m_ref[...] = m_new

            @pl.when(j == pl.num_programs(1) - 1)
            def _():
                lse_ref[...] = m_ref[...] + jnp.log(l_ref[...])

    return kernel


def project_logits_lse(h_flat, w_out, b_out, V):
    M, K = h_flat.shape
    Vp = w_out.shape[1]
    tm = _tile(M, 256, 8)
    tk = _tile(K, 512, 128)
    tv = _tile(Vp, 2048, 128)
    # TODO(synk): on v7x, a fp8 w_out copy would halve the weight DMA here.
    return pl.pallas_call(
        make_logits_lse_kernel(V, tv),
        out_shape=(jax.ShapeDtypeStruct((M, Vp), jnp.float32),
                   jax.ShapeDtypeStruct((M, 1), jnp.float32)),
        grid_spec=pltpu.PrefetchScalarGridSpec(
            num_scalar_prefetch=0,
            grid=(M // tm, Vp // tv, K // tk),
            in_specs=[
                pl.BlockSpec((tm, tk), lambda i, j, k: (i, k)),
                pl.BlockSpec((tk, tv), lambda i, j, k: (k, j)),
                pl.BlockSpec((1, tv), lambda i, j, k: (0, j)),
            ],
            out_specs=[
                pl.BlockSpec((tm, tv), lambda i, j, k: (i, j)),
                pl.BlockSpec((tm, 1), lambda i, j, k: (i, 0)),
            ],
            scratch_shapes=[
                pltpu.VMEM((tm, tv), jnp.float32),   # matmul accumulator
                pltpu.VMEM((tm, 1), jnp.float32),    # running max
                pltpu.VMEM((tm, 1), jnp.float32),    # running sum-exp
            ],
        ),
        compiler_params=pltpu.CompilerParams(
            dimension_semantics=("parallel", "arbitrary", "arbitrary"),
            vmem_limit_bytes=_vmem_limit(),
        ),
    )(h_flat, w_out, b_out)


# ---------------------------------------------------------------------------
# Kernel 3b: cheap tiled normalize: log_probs = logits - lse
# ---------------------------------------------------------------------------
def _normalize_kernel(logits_ref, lse_ref, o_ref):
    o_ref[...] = logits_ref[...] - lse_ref[...]


def normalize_logits(logits, lse):
    M, Vp = logits.shape
    tm = _tile(M, 512, 8)
    tv = _tile(Vp, 4096, 128)
    return pl.pallas_call(
        _normalize_kernel,
        out_shape=jax.ShapeDtypeStruct((M, Vp), jnp.float32),
        grid_spec=pltpu.PrefetchScalarGridSpec(
            num_scalar_prefetch=0,
            grid=(M // tm, Vp // tv),
            in_specs=[
                pl.BlockSpec((tm, tv), lambda i, j: (i, j)),
                pl.BlockSpec((tm, 1), lambda i, j: (i, 0)),
            ],
            out_specs=pl.BlockSpec((tm, tv), lambda i, j: (i, j)),
        ),
        compiler_params=pltpu.CompilerParams(
            dimension_semantics=("parallel", "parallel"),
            vmem_limit_bytes=_vmem_limit(),
        ),
    )(logits, lse)


# ---------------------------------------------------------------------------
# Forward pass
# ---------------------------------------------------------------------------
def clm_forward(tokens, lengths, params, *, time_chunk=16):
    """tokens: (B, T) int32, lengths: (B,) int32 -> (B, T, V) float32 log-probs."""
    L = params["n_layers"]
    Hp, Ep, Vp = params["Hp"], params["Ep"], params["Vp"]
    V = params["vocab_size"]
    B, T = tokens.shape

    Bp = _round_up(max(B, 16), 16)           # bf16 sublane tile is (16, 128)
    Tc = max(int(time_chunk), 1)
    # Pad T so that Tc | Tp and M = Tp*Bp is a multiple of 256 (full MXU row tiles).
    r = 256 // math.gcd(256, Bp)
    Tp = _round_up(T, _lcm(Tc, r))
    M = Tp * Bp

    # Embedding lookup (XLA glue), gathered directly time-major -> no transpose copy.
    x = params["emb_p"][tokens.T]                                # (T, B, Ep) bf16
    x = jnp.pad(x, ((0, Tp - T), (0, Bp - B), (0, 0)))
    feat = x.reshape(M, Ep)

    # per-batch valid lengths; padded batch rows get length 0 -> fully masked
    len_col = jnp.pad(lengths.astype(jnp.int32), (0, Bp - B)).reshape(Bp, 1)

    for l in range(L):
        # hoisted input-to-hidden matmul over all timesteps (bf16 gx, bias fused)
        gx = matmul_bias(feat, params["w_ih_p"][l], params["b_p"][l],
                         out_dtype=jnp.bfloat16)                 # (M, 4Hp) bf16
        gx_tm = gx.reshape(Tp, Bp, 4 * Hp)
        h_tm = lstm_layer(gx_tm, params["w_hh_p"][l], len_col, Tc=Tc)
        feat = h_tm.reshape(M, Hp)                               # masked rows = 0

    logits, lse = project_logits_lse(feat, params["w_out_p"], params["b_out_p"], V)
    logp = normalize_logits(logits, lse)                         # (M, Vp) f32
    logp = logp.reshape(Tp, Bp, Vp)[:T, :B, :V]
    return jnp.transpose(logp, (1, 0, 2))                        # (B, T, V)


# ---------------------------------------------------------------------------
# Parameters (logical f32 for the reference + padded/bf16 copies for the kernel)
# ---------------------------------------------------------------------------
def _pad_gate_cols(w, H, Hp):
    """(rows, 4H) -> (rows, 4Hp): pad each of the 4 gate blocks to Hp columns."""
    rows = w.shape[0]
    wg = w.reshape(rows, 4, H)
    wg = jnp.pad(wg, ((0, 0), (0, 0), (0, Hp - H)))
    return wg.reshape(rows, 4 * Hp)


def init_params(key, emb_dim, hidden_dim, n_layers, vocab_size):
    k = 1.0 / np.sqrt(hidden_dim)
    keys = iter(jax.random.split(key, 4 * n_layers + 4))
    p = {"hidden_dim": hidden_dim, "n_layers": n_layers,
         "emb_dim": emb_dim, "vocab_size": vocab_size}
    Hp = _round_up(hidden_dim, 128)
    Ep = _round_up(emb_dim, 128)
    Vp = _round_up(vocab_size, 128)
    p["Hp"], p["Ep"], p["Vp"] = Hp, Ep, Vp

    p["emb"] = jax.random.normal(next(keys), (vocab_size, emb_dim), jnp.float32)
    p["w_ih"], p["w_hh"], p["b"] = [], [], []
    for l in range(n_layers):
        in_dim = emb_dim if l == 0 else hidden_dim
        # stored transposed relative to PyTorch: (in_dim, 4H) so kernels do x @ W
        p["w_ih"].append(jax.random.uniform(
            next(keys), (in_dim, 4 * hidden_dim), jnp.float32, -k, k))
        p["w_hh"].append(jax.random.uniform(
            next(keys), (hidden_dim, 4 * hidden_dim), jnp.float32, -k, k))
        b_ih = jax.random.uniform(next(keys), (4 * hidden_dim,), jnp.float32, -k, k)
        b_hh = jax.random.uniform(next(keys), (4 * hidden_dim,), jnp.float32, -k, k)
        p["b"].append((b_ih + b_hh)[None, :])                           # (1, 4H)
    p["w_out"] = jax.random.uniform(
        next(keys), (hidden_dim, vocab_size), jnp.float32, -k, k)
    p["b_out"] = jax.random.uniform(
        next(keys), (vocab_size,), jnp.float32, -k, k)[None, :]         # (1, V)

    # ----- padded / cast copies for the TPU kernels -----
    H, E, Vs = hidden_dim, emb_dim, vocab_size
    p["emb_p"] = jnp.pad(p["emb"], ((0, 0), (0, Ep - E))).astype(jnp.bfloat16)
    p["w_ih_p"], p["w_hh_p"], p["b_p"] = [], [], []
    for l in range(n_layers):
        in_dim = E if l == 0 else H
        in_dim_p = Ep if l == 0 else Hp
        w_ih = _pad_gate_cols(p["w_ih"][l], H, Hp)
        w_ih = jnp.pad(w_ih, ((0, in_dim_p - in_dim), (0, 0)))
        p["w_ih_p"].append(w_ih.astype(jnp.bfloat16))                   # (in_p, 4Hp)
        w_hh = _pad_gate_cols(p["w_hh"][l], H, Hp)
        w_hh = jnp.pad(w_hh, ((0, Hp - H), (0, 0)))
        p["w_hh_p"].append(w_hh.astype(jnp.bfloat16))                   # (Hp, 4Hp)
        p["b_p"].append(_pad_gate_cols(p["b"][l], H, Hp))               # (1, 4Hp) f32
    p["w_out_p"] = jnp.pad(p["w_out"],
                           ((0, Hp - H), (0, Vp - Vs))).astype(jnp.bfloat16)
    p["b_out_p"] = jnp.pad(p["b_out"], ((0, 0), (0, Vp - Vs)))          # (1, Vp) f32
    return p


# ---------------------------------------------------------------------------
# Pure-JAX reference (mirrors the kernel's bf16-matmul / bf16-gx / f32-acc math)
# ---------------------------------------------------------------------------
def clm_ref(tokens, lengths, params):
    H = params["hidden_dim"]
    L = params["n_layers"]
    bf = jnp.bfloat16

    def mm(a, w):
        return jnp.dot(a.astype(bf), w.astype(bf),
                       preferred_element_type=jnp.float32)

    x = params["emb"][tokens].astype(jnp.float32)                       # (B, T, E)
    B, T, _ = x.shape
    for l in range(L):
        w_ih, w_hh, b = params["w_ih"][l], params["w_hh"][l], params["b"][l]
        gx = mm(x.reshape(B * T, -1), w_ih).reshape(B, T, 4 * H) + b
        gx = gx.astype(bf).astype(jnp.float32)        # mirror kernel's bf16 gx

        def step(carry, g_t, w_hh=w_hh):
            h, c = carry
            gates = g_t + mm(h, w_hh)
            i = jax.nn.sigmoid(gates[:, :H])
            f = jax.nn.sigmoid(gates[:, H:2 * H])
            g = jnp.tanh(gates[:, 2 * H:3 * H])
            o = jax.nn.sigmoid(gates[:, 3 * H:])
            c = f * c + i * g
            h = o * jnp.tanh(c)
            return (h, c), h

        init = (jnp.zeros((B, H), jnp.float32), jnp.zeros((B, H), jnp.float32))
        _, hs = jax.lax.scan(step, init, jnp.transpose(gx, (1, 0, 2)))
        x = jnp.transpose(hs, (1, 0, 2))

    mask = (jnp.arange(T)[None, :] < lengths[:, None]).astype(jnp.float32)[..., None]
    logits = mm((x * mask).reshape(B * T, H),
                params["w_out"]).reshape(B, T, -1) + params["b_out"]
    return jax.nn.log_softmax(logits, axis=-1)


if __name__ == "__main__":
    # TODO(synk): the non-batch (stateful, state-carry) path of CLM.forward is not
    # implemented; only the batch=True path (pack/pad emulated by masking) is.
    B, T = 4, 8
    emb_dim, hidden_dim, n_layers, vocab_size = 32, 32, 2, 16

    key = jax.random.PRNGKey(0)
    kp, kt = jax.random.split(key)
    params = init_params(kp, emb_dim, hidden_dim, n_layers, vocab_size)

    tokens = jax.random.randint(kt, (B, T), 0, vocab_size, dtype=jnp.int32)
    lengths = jnp.array([8, 6, 5, 3], dtype=jnp.int32)   # padded positions at the end

    out = clm_forward(tokens, lengths, params, time_chunk=16)
    out = jax.block_until_ready(out)
    assert out.shape == (B, T, vocab_size)

    ref = clm_ref(tokens, lengths, params)
    np.testing.assert_allclose(np.asarray(out), np.asarray(ref), atol=2e-3, rtol=2e-3)

    print("KERNEL_OK")
</pallas_src>

<mosaic_0001>
module attributes {stable_mosaic.version = 11 : i64} {
  func.func @_matmul_bias_kernel(%arg0: i32, %arg1: i32, %arg2: i32, %arg3: memref<256x128xbf16, #tpu.memory_space<vmem>>, %arg4: memref<128x512xbf16, #tpu.memory_space<vmem>>, %arg5: memref<1x512xf32, #tpu.memory_space<vmem>>, %arg6: memref<256x512xbf16, #tpu.memory_space<vmem>>, %arg7: memref<256x512xf32, #tpu.memory_space<vmem>>) attributes {dimension_semantics = [#tpu.dimension_semantics<parallel>, #tpu.dimension_semantics<parallel>, #tpu.dimension_semantics<arbitrary>], iteration_bounds = array<i64: 1, 1, 1>, scalar_prefetch = 0 : i64, scratch_operands = 1 : i64, tpu.core_type = #tpu.core_type<tc>, window_params = [{transform_indices = @transform_0, window_bounds = array<i64: 256, 128>}, {transform_indices = @transform_1, window_bounds = array<i64: 128, 512>}, {transform_indices = @transform_2, window_bounds = array<i64: 1, 512>}, {transform_indices = @transform_3, window_bounds = array<i64: 256, 512>}]} {
    %c0_i32 = arith.constant 0 : i32
    %0 = arith.cmpi eq, %arg2, %c0_i32 : i32
    %1 = arith.extui %0 : i1 to i32
    %c0_i32_0 = arith.constant 0 : i32
    %2 = arith.cmpi ne, %1, %c0_i32_0 : i32
    scf.if %2 {
      %cst_10 = arith.constant 0.000000e+00 : f32
      %12 = vector.broadcast %cst_10 : f32 to vector<256x512xf32>
      %c0_11 = arith.constant 0 : index
      %c0_12 = arith.constant 0 : index
      %13 = vector.load %arg7[%c0_11, %c0_12] : memref<256x512xf32, #tpu.memory_space<vmem>>, vector<256x512xf32>
      tpu.vector_store %arg7[%c0_11, %c0_12], %12 {strides = array<i32>} : memref<256x512xf32, #tpu.memory_space<vmem>>, vector<256x512xf32>,
    } else {
    }
    %c0 = arith.constant 0 : index
    %c0_1 = arith.constant 0 : index
    %3 = vector.load %arg7[%c0, %c0_1] : memref<256x512xf32, #tpu.memory_space<vmem>>, vector<256x512xf32>
    %c0_2 = arith.constant 0 : index
    %c0_3 = arith.constant 0 : index
    %4 = vector.load %arg3[%c0_2, %c0_3] : memref<256x128xbf16, #tpu.memory_space<vmem>>, vector<256x128xbf16>
    %c0_4 = arith.constant 0 : index
    %c0_5 = arith.constant 0 : index
    %5 = vector.load %arg4[%c0_4, %c0_5] : memref<128x512xbf16, #tpu.memory_space<vmem>>, vector<128x512xbf16>
    %cst = arith.constant dense<0.000000e+00> : vector<256x512xf32>
    %6 = tpu.matmul %4, %5, %cst {dimension_numbers = #tpu.dot_dimension_numbers<[1], [0], [0], [1], [0, 0, 1, 1], [], []>} : vector<256x128xbf16>, vector<128x512xbf16>, vector<256x512xf32> -> vector<256x512xf32>
    %7 = arith.addf %3, %6 : vector<256x512xf32>
    %c0_6 = arith.constant 0 : index
    %c0_7 = arith.constant 0 : index
    %8 = vector.load %arg7[%c0_6, %c0_7] : memref<256x512xf32, #tpu.memory_space<vmem>>, vector<256x512xf32>
    tpu.vector_store %arg7[%c0_6, %c0_7], %7 {strides = array<i32>} : memref<256x512xf32, #tpu.memory_space<vmem>>, vector<256x512xf32>,
    %c0_i32_8 = arith.constant 0 : i32
    %9 = arith.cmpi eq, %arg2, %c0_i32_8 : i32
    %10 = arith.extui %9 : i1 to i32
    %c0_i32_9 = arith.constant 0 : i32
    %11 = arith.cmpi ne, %10, %c0_i32_9 : i32
    scf.if %11 {
      %c0_10 = arith.constant 0 : index
      %c0_11 = arith.constant 0 : index
      %12 = vector.load %arg7[%c0_10, %c0_11] : memref<256x512xf32, #tpu.memory_space<vmem>>, vector<256x512xf32>
      %c0_12 = arith.constant 0 : index
      %c0_13 = arith.constant 0 : index
      %13 = vector.load %arg5[%c0_12, %c0_13] : memref<1x512xf32, #tpu.memory_space<vmem>>, vector<1x512xf32>
      %14 = vector.broadcast %13 : vector<1x512xf32> to vector<256x512xf32>
      %15 = arith.addf %12, %14 : vector<256x512xf32>
      %16 = arith.truncf %15 : vector<256x512xf32> to vector<256x512xbf16>
      %c0_14 = arith.constant 0 : index
      %c0_15 = arith.constant 0 : index
      %17 = vector.load %arg6[%c0_14, %c0_15] : memref<256x512xbf16, #tpu.memory_space<vmem>>, vector<256x512xbf16>
      tpu.vector_store %arg6[%c0_14, %c0_15], %16 {strides = array<i32>} : memref<256x512xbf16, #tpu.memory_space<vmem>>, vector<256x512xbf16>,
    } else {
    }
    return
  }
  func.func @transform_0(%arg0: i32, %arg1: i32, %arg2: i32) -> (i32, i32) {
    %c0_i32 = arith.constant 0 : i32
    return %arg0, %arg2 : i32, i32
  }
  func.func @transform_1(%arg0: i32, %arg1: i32, %arg2: i32) -> (i32, i32) {
    %c0_i32 = arith.constant 0 : i32
    return %arg2, %arg1 : i32, i32
  }
  func.func @transform_2(%arg0: i32, %arg1: i32, %arg2: i32) -> (i32, i32) {
    %c0_i32 = arith.constant 0 : i32
    %c0_i32_0 = arith.constant 0 : i32
    return %c0_i32, %arg1 : i32, i32
  }
  func.func @transform_3(%arg0: i32, %arg1: i32, %arg2: i32) -> (i32, i32) {
    %c0_i32 = arith.constant 0 : i32
    return %arg0, %arg1 : i32, i32
  }
}

</mosaic_0001>

<bundles_post_ra>
// kernel: tpu_custom_call.1
= control target key start
LH: loop header
LB: loop body
LE: loop exit
PB: predicated region body
PF: predicated region fallthrough
CT: control target
= control target key end

     0   :  { %8 = vsyncpa [#allocation4], 0  ;;  %s2201_s0 = inlined_call_operand.hbm [shape: bf16[256,128], index: 0, kind: input, shape index: {}]   ;;  %s2202_s1 = inlined_call_operand.hbm [shape: bf16[128,512], index: 1, kind: input, shape index: {}]   ;;  %s2203_s2 = inlined_call_operand.hbm [shape: f32[1,512], index: 2, kind: input, shape index: {}]   ;;  %s2204_s3 = inlined_call_operand.hbm [shape: bf16[256,512], index: 3, kind: output, shape index: {}]  }
   0x1   :  { %9 = vsyncpa [#allocation7], 0  ;;  %s28_s14 = sshll.u32 %s2202_s1, 4  ;;  %s29_s14 = int_to_ptr.hbm [resolvable:$true] %s28_s14 }
   0x2   :  { %10 = vsyncpa [#allocation5], 0  ;;  %s2019_s15 = smov [#allocation6]   ;;  %s15_s19 = sshll.u32 %s2201_s0, 4  ;;  %s16_s19 = int_to_ptr.hbm [resolvable:$true] %s15_s19 }
   0x3   :  { %s30_s16 = sshll.u32 %s2019_s15, 4  ;;  %s2020_s20 = smov 256   ;;  %s31_s16 = int_to_ptr.vmem [resolvable:$true] %s30_s16 }
   0x4   :  { %s2021_s21 = smov 16   ;;  %s2022_s22 = smov [#allocation3]  }
   0x5   :  { %36 = dma.hbm_to_vmem [thread:$0]  %s29_s14, 4096, %s31_s16, [#allocation7], %s2020_s20, %s2020_s20, %s2021_s21  }
   0x6   :  { %s17_s23 = sshll.u32 %s2022_s22, 4  ;;  %s2023_s1 = smov 64   ;;  %s18_s23 = int_to_ptr.vmem [resolvable:$true] %s17_s23 }
   0x7   :  { %s2024_s24 = smov 4   ;;  %s42_s27 = sshll.u32 %s2203_s2, 4  ;;  %s43_s27 = int_to_ptr.hbm [resolvable:$true] %s42_s27 }
   0x8   :  { %23 = dma.hbm_to_vmem [thread:$0]  %s16_s19, 2048, %s18_s23, [#allocation4], %s2023_s1, %s2023_s1, %s2024_s24  }
   0x9   :  { %s2025_s28 = smov [#allocation8]  }
   0xa   :  { %s44_s0 = sshll.u32 %s2025_s28, 4  ;;  %s45_s0 = int_to_ptr.vmem [resolvable:$true] %s44_s0 }
   0xb   :  { %47 = dma.hbm_to_vmem [thread:$0]  %s43_s27, 64, %s45_s0, [#allocation7]  }
   0xc   :  { %2013 = dma.done.wait [#allocation4], 2048  }
   0xd   :  { %2014 = vsyncadd [#allocation4], 4294965248 }
   0xe   :  { %2015 = dma.done.wait [#allocation7], 4160  }
   0xf   :  { %2016 = vsyncadd [#allocation7], 4294963136  ;;  %v1847_v0 = vld [vmem:[#allocation6 + $0xe0] sm:$0xf]  ;;  %v1907_v1 = vld [vmem:[#allocation6 + $0xec] sm:$0xf0] }
  0x10   :  { %v1905_v2 = vld [vmem:[#allocation6 + $0xe4] sm:$0xf]  ;;  %v1848_v3 = vor.u32 %v1907_v1, %v1847_v0  ;;  %v1849_v4 = vld [vmem:[#allocation6 + $0xf0] sm:$0xf0]  ;;  %v1855_v5 = vld [vmem:[#allocation6 + $0xe8] sm:$0xf] }
  0x11   :  { %v1908_v6 = vld [vmem:[#allocation6 + $0xf4] sm:$0xf0]  ;;  %v1852_v7 = vor.u32 %v1905_v2, %v1849_v4  ;;  %v1906_v9 = vld [vmem:[#allocation6 + $0xec] sm:$0xf]  ;;  %v1857_v10 = vld [vmem:[#allocation6 + $0xf8] sm:$0xf0] }
  0x12   :  { %v1856_v8 = vor.u32 %v1908_v6, %v1855_v5  ;;  %v1831_v11 = vld [vmem:[#allocation6 + $0xc0] sm:$0xf]  ;;  %640 = vmatpush.bf16.msra.mxu0 %v1848_v3  ;;  %v1860_v12 = vor.u32 %v1906_v9, %v1857_v10  ;;  %v1903_v13 = vld [vmem:[#allocation6 + $0xcc] sm:$0xf0]  ;;  %v1901_v14 = vld [vmem:[#allocation6 + $0xc4] sm:$0xf] }
  0x13   :  { %v1833_v15 = vld [vmem:[#allocation6 + $0xd0] sm:$0xf0]  ;;  %729 = vmatpush.bf16.msra.mxu1 %v1852_v7  ;;  %v1832_v16 = vor.u32 %v1903_v13, %v1831_v11  ;;  %v1839_v18 = vld [vmem:[#allocation6 + $0xc8] sm:$0xf]  ;;  %v1904_v19 = vld [vmem:[#allocation6 + $0xd4] sm:$0xf0] }
  0x14   :  { %818 = vmatpush.bf16.msra.mxu2 %v1856_v8  ;;  %v1836_v17 = vor.u32 %v1901_v14, %v1833_v15  ;;  %v1902_v20 = vld [vmem:[#allocation6 + $0xcc] sm:$0xf]  ;;  %907 = vmatpush.bf16.msra.mxu3 %v1860_v12  ;;  %v1840_v21 = vor.u32 %v1904_v19, %v1839_v18  ;;  %v1841_v22 = vld [vmem:[#allocation6 + $0xd8] sm:$0xf0]  ;;  %v1815_v23 = vld [vmem:[#allocation6 + $0xa0] sm:$0xf] }
  0x15   :  { %v1899_v24 = vld [vmem:[#allocation6 + $0xac] sm:$0xf0]  ;;  %v1844_v25 = vor.u32 %v1902_v20, %v1841_v22  ;;  %v1897_v26 = vld [vmem:[#allocation6 + $0xa4] sm:$0xf]  ;;  %v1817_v27 = vld [vmem:[#allocation6 + $0xb0] sm:$0xf0] }
  0x16   :  { %v1823_v28 = vld [vmem:[#allocation6 + $0xa8] sm:$0xf]  ;;  %641 = vmatpush.bf16.msra.mxu0 %v1832_v16  ;;  %v1816_v29 = vor.u32 %v1899_v24, %v1815_v23  ;;  %v1900_v30 = vld [vmem:[#allocation6 + $0xb4] sm:$0xf0]  ;;  %v1898_v31 = vld [vmem:[#allocation6 + $0xac] sm:$0xf]  ;;  %v1820_v33 = vor.u32 %v1897_v26, %v1817_v27 }
  0x17   :  { %v1825_v32 = vld [vmem:[#allocation6 + $0xb8] sm:$0xf0]  ;;  %730 = vmatpush.bf16.msra.mxu1 %v1836_v17  ;;  %v1824_v34 = vor.u32 %v1900_v30, %v1823_v28  ;;  %v1799_v35 = vld [vmem:[#allocation6 + $0x80] sm:$0xf]  ;;  %v1895_v36 = vld [vmem:[#allocation6 + $0x8c] sm:$0xf0] }
  0x18   :  { %819 = vmatpush.bf16.msra.mxu2 %v1840_v21  ;;  %v1893_v37 = vld [vmem:[#allocation6 + $0x84] sm:$0xf]  ;;  %908 = vmatpush.bf16.msra.mxu3 %v1844_v25  ;;  %v1828_v38 = vor.u32 %v1898_v31, %v1825_v32  ;;  %v1801_v39 = vld [vmem:[#allocation6 + $0x90] sm:$0xf0]  ;;  %v1807_v40 = vld [vmem:[#allocation6 + $0x88] sm:$0xf]  ;;  %v1800_v44 = vor.u32 %v1895_v36, %v1799_v35 }
  0x19   :  { %v1896_v41 = vld [vmem:[#allocation6 + $0x94] sm:$0xf0]  ;;  %v1894_v42 = vld [vmem:[#allocation6 + $0x8c] sm:$0xf]  ;;  %v1809_v43 = vld [vmem:[#allocation6 + $0x98] sm:$0xf0]  ;;  %v1804_v45 = vor.u32 %v1893_v37, %v1801_v39 }
  0x1a   :  { %642 = vmatpush.bf16.msra.mxu0 %v1816_v29  ;;  %v1808_v46 = vor.u32 %v1896_v41, %v1807_v40  ;;  %v1783_v47 = vld [vmem:[#allocation6 + $0x60] sm:$0xf]  ;;  %v1891_v48 = vld [vmem:[#allocation6 + $0x6c] sm:$0xf0]  ;;  %v1889_v49 = vld [vmem:[#allocation6 + $0x64] sm:$0xf]  ;;  %v1812_v50 = vor.u32 %v1894_v42, %v1809_v43 }
  0x1b   :  { %731 = vmatpush.bf16.msra.mxu1 %v1820_v33  ;;  %v1785_v51 = vld [vmem:[#allocation6 + $0x70] sm:$0xf0]  ;;  %v1791_v52 = vld [vmem:[#allocation6 + $0x68] sm:$0xf]  ;;  %v1892_v53 = vld [vmem:[#allocation6 + $0x74] sm:$0xf0]  ;;  %v1784_v56 = vor.u32 %v1891_v48, %v1783_v47 }
  0x1c   :  { %820 = vmatpush.bf16.msra.mxu2 %v1824_v34  ;;  %909 = vmatpush.bf16.msra.mxu3 %v1828_v38  ;;  %v1890_v54 = vld [vmem:[#allocation6 + $0x6c] sm:$0xf]  ;;  %v1793_v55 = vld [vmem:[#allocation6 + $0x78] sm:$0xf0]  ;;  %v1788_v57 = vor.u32 %v1889_v49, %v1785_v51  ;;  %v1792_v58 = vor.u32 %v1892_v53, %v1791_v52  ;;  %v1767_v59 = vld [vmem:[#allocation6 + $0x40] sm:$0xf] }
  0x1d   :  { %v1887_v60 = vld [vmem:[#allocation6 + $0x4c] sm:$0xf0]  ;;  %v1885_v61 = vld [vmem:[#allocation6 + $0x44] sm:$0xf]  ;;  %v1796_v62 = vor.u32 %v1890_v54, %v1793_v55  ;;  %v1769_v63 = vld [vmem:[#allocation6 + $0x50] sm:$0xf0] }
  0x1e   :  { %643 = vmatpush.bf16.msra.mxu0 %v1800_v44  ;;  %v1775_v0 = vld [vmem:[#allocation6 + $0x48] sm:$0xf]  ;;  %v1888_v1 = vld [vmem:[#allocation6 + $0x54] sm:$0xf0]  ;;  %v1886_v2 = vld [vmem:[#allocation6 + $0x4c] sm:$0xf]  ;;  %v1768_v4 = vor.u32 %v1887_v60, %v1767_v59  ;;  %v1772_v5 = vor.u32 %v1885_v61, %v1769_v63 }
  0x1f   :  { %732 = vmatpush.bf16.msra.mxu1 %v1804_v45  ;;  %v1777_v3 = vld [vmem:[#allocation6 + $0x58] sm:$0xf0]  ;;  %v1776_v6 = vor.u32 %v1888_v1, %v1775_v0  ;;  %v1751_v7 = vld [vmem:[#allocation6 + $0x20] sm:$0xf]  ;;  %v1883_v8 = vld [vmem:[#allocation6 + $0x2c] sm:$0xf0] }
  0x20   :  { %821 = vmatpush.bf16.msra.mxu2 %v1808_v46  ;;  %910 = vmatpush.bf16.msra.mxu3 %v1812_v50  ;;  %v1881_v9 = vld [vmem:[#allocation6 + $0x24] sm:$0xf]  ;;  %v1780_v10 = vor.u32 %v1886_v2, %v1777_v3  ;;  %v1753_v11 = vld [vmem:[#allocation6 + $0x30] sm:$0xf0]  ;;  %v1759_v12 = vld [vmem:[#allocation6 + $0x28] sm:$0xf]  ;;  %v1752_v16 = vor.u32 %v1883_v8, %v1751_v7 }
  0x21   :  { %v1884_v13 = vld [vmem:[#allocation6 + $0x34] sm:$0xf0]  ;;  %v1882_v14 = vld [vmem:[#allocation6 + $0x2c] sm:$0xf]  ;;  %v1761_v15 = vld [vmem:[#allocation6 + $0x38] sm:$0xf0]  ;;  %v1756_v17 = vor.u32 %v1881_v9, %v1753_v11 }
  0x22   :  { %644 = vmatpush.bf16.msra.mxu0 %v1784_v56  ;;  %v1760_v18 = vor.u32 %v1884_v13, %v1759_v12  ;;  %v1735_v19 = vld [vmem:[#allocation6] sm:$0xf]  ;;  %v1879_v20 = vld [vmem:[#allocation6 + $0xc] sm:$0xf0]  ;;  %v1877_v21 = vld [vmem:[#allocation6 + $0x4] sm:$0xf]  ;;  %v1764_v22 = vor.u32 %v1882_v14, %v1761_v15 }
  0x23   :  { %733 = vmatpush.bf16.msra.mxu1 %v1788_v57  ;;  %v1737_v23 = vld [vmem:[#allocation6 + $0x10] sm:$0xf0]  ;;  %v1743_v24 = vld [vmem:[#allocation6 + $0x8] sm:$0xf]  ;;  %v1880_v25 = vld [vmem:[#allocation6 + $0x14] sm:$0xf0]  ;;  %v1736_v28 = vor.u32 %v1879_v20, %v1735_v19 }
  0x24   :  { %822 = vmatpush.bf16.msra.mxu2 %v1792_v58  ;;  %911 = vmatpush.bf16.msra.mxu3 %v1796_v62  ;;  %v1878_v26 = vld [vmem:[#allocation6 + $0xc] sm:$0xf]  ;;  %v1745_v27 = vld [vmem:[#allocation6 + $0x18] sm:$0xf0]  ;;  %v1740_v29 = vor.u32 %v1877_v21, %v1737_v23  ;;  %v1744_v30 = vor.u32 %v1880_v25, %v1743_v24  ;;  %v1861_v32 = vld [vmem:[#allocation3] sm:$0xff]  ;;  %s2026_s2 = smov [#allocation9]  }
  0x25   :  { %v1748_v31 = vor.u32 %v1878_v26, %v1745_v27  ;;  %v1862_v33 = vld [vmem:[#allocation3 + $0x8] sm:$0xff]  ;;  %v1863_v34 = vld [vmem:[#allocation3 + $0x10] sm:$0xff]  ;;  %v1864_v35 = vld [vmem:[#allocation3 + $0x18] sm:$0xff]  ;;  %s1653_s29 = sshll.u32 %s2026_s2, 4  ;;  %s1655_s5 = sshll.u32 %s2204_s3, 4  ;;  %s1654_s29 = int_to_ptr.vmem [resolvable:$true] %s1653_s29  ;;  %s1656_s5 = int_to_ptr.hbm [resolvable:$true] %s1655_s5 }
  0x26   :  { %645 = vmatpush.bf16.msra.mxu0 %v1768_v4  ;;  %v1865_v36 = vld [vmem:[#allocation3 + $0x20] sm:$0xff]  ;;  %v1866_v37 = vld [vmem:[#allocation3 + $0x28] sm:$0xff]  ;;  %v1867_v38 = vld [vmem:[#allocation3 + $0x30] sm:$0xff] }
  0x27   :  { %734 = vmatpush.bf16.msra.mxu1 %v1772_v5  ;;  %v1868_v39 = vld [vmem:[#allocation3 + $0x38] sm:$0xff]  ;;  %v1383_v40 = vld [vmem:[#allocation8] sm:$0xf]  ;;  %v1870_v62 = vld [vmem:[#allocation3 + $0x48] sm:$0xff] }
  0x28   :  { %823 = vmatpush.bf16.msra.mxu2 %v1776_v6  ;;  %912 = vmatpush.bf16.msra.mxu3 %v1780_v10  ;;  %v2059_v41 = vperm.slane %v1383_v40, 0  ;;  %v2061_v42 = vperm.slane %v1383_v40, 1  ;;  %v1869_v43 = vld [vmem:[#allocation3 + $0x40] sm:$0xff]  ;;  %v2065_v49 = vperm.slane %v1383_v40, 2  ;;  %v2067_v50 = vperm.slane %v1383_v40, 3  ;;  %v1871_v19 = vld [vmem:[#allocation3 + $0x50] sm:$0xff] }
  0x29   :  { %v1872_v40 = vld [vmem:[#allocation3 + $0x58] sm:$0xff] }
  0x2a   :  { %646 = vmatpush.bf16.msra.mxu0 %v1752_v16 }
  0x2b   :  { %735 = vmatpush.bf16.msra.mxu1 %v1756_v17 }
  0x2c   :  { %824 = vmatpush.bf16.msra.mxu2 %v1760_v18  ;;  %913 = vmatpush.bf16.msra.mxu3 %v1764_v22 }
  0x2e   :  { %647 = vmatpush.bf16.msra.mxu0 %v1736_v28 }
  0x2f   :  { %736 = vmatpush.bf16.msra.mxu1 %v1740_v29 }
  0x30   :  { %825 = vmatpush.bf16.msra.mxu2 %v1744_v30  ;;  %914 = vmatpush.bf16.msra.mxu3 %v1748_v31 }
  0x31   :  { %648 = vmatmul.bf16.vlgmr.msra.gmra.mxu0 %v1861_v32 }
  0x32   :  { %737 = vmatmul.bf16.vlgmr.msra.gmra.mxu1 %v1861_v32 }
  0x33   :  { %826 = vmatmul.bf16.vlgmr.msra.gmra.mxu2 %v1861_v32  ;;  %915 = vmatmul.bf16.vlgmr.msra.gmra.mxu3 %v1861_v32 }
  0x41   :  { %653 = vmatmul.bf16.gmra.mxu0 %v1862_v33 }
  0x42   :  { %742 = vmatmul.bf16.gmra.mxu1 %v1862_v33 }
  0x43   :  { %831 = vmatmul.bf16.gmra.mxu2 %v1862_v33  ;;  %920 = vmatmul.bf16.gmra.mxu3 %v1862_v33 }
  0x51   :  { %658 = vmatmul.bf16.gmra.mxu0 %v1863_v34 }
  0x52   :  { %747 = vmatmul.bf16.gmra.mxu1 %v1863_v34 }
  0x53   :  { %836 = vmatmul.bf16.gmra.mxu2 %v1863_v34  ;;  %925 = vmatmul.bf16.gmra.mxu3 %v1863_v34 }
  0x61   :  { %663 = vmatmul.bf16.gmra.mxu0 %v1864_v35 }
  0x62   :  { %752 = vmatmul.bf16.gmra.mxu1 %v1864_v35 }
  0x63   :  { %841 = vmatmul.bf16.gmra.mxu2 %v1864_v35  ;;  %930 = vmatmul.bf16.gmra.mxu3 %v1864_v35 }
  0x71   :  { %668 = vmatmul.bf16.gmra.mxu0 %v1865_v36 }
  0x72   :  { %757 = vmatmul.bf16.gmra.mxu1 %v1865_v36 }
  0x73   :  { %846 = vmatmul.bf16.gmra.mxu2 %v1865_v36  ;;  %935 = vmatmul.bf16.gmra.mxu3 %v1865_v36 }
  0x81   :  { %673 = vmatmul.bf16.gmra.mxu0 %v1866_v37 }
  0x82   :  { %762 = vmatmul.bf16.gmra.mxu1 %v1866_v37 }
  0x83   :  { %851 = vmatmul.bf16.gmra.mxu2 %v1866_v37  ;;  %940 = vmatmul.bf16.gmra.mxu3 %v1866_v37 }
  0x91   :  { %678 = vmatmul.bf16.gmra.mxu0 %v1867_v38 }
  0x92   :  { %767 = vmatmul.bf16.gmra.mxu1 %v1867_v38 }
  0x93   :  { %856 = vmatmul.bf16.gmra.mxu2 %v1867_v38  ;;  %945 = vmatmul.bf16.gmra.mxu3 %v1867_v38 }
  0xa1   :  { %683 = vmatmul.bf16.gmra.mxu0 %v1868_v39 }
  0xa2   :  { %772 = vmatmul.bf16.gmra.mxu1 %v1868_v39 }
  0xa3   :  { %861 = vmatmul.bf16.gmra.mxu2 %v1868_v39  ;;  %950 = vmatmul.bf16.gmra.mxu3 %v1868_v39 }
  0xae   :  { %v649_v44 = vpop.f32.mrf.mxu0 }
  0xaf   :  { %v1393_v45 = vadd.f32 %v2059_v41, %v649_v44  ;;  %v738_v46 = vpop.f32.mrf.mxu1 }
  0xb0   :  { %v1394_v47 = vadd.f32 %v2061_v42, %v738_v46 }
  0xb1   :  { %688 = vmatmul.bf16.gmra.mxu0 %v1869_v43 }
  0xb2   :  { %v1521_v48 = vpack.c.bf16 %v1394_v47, %v1393_v45  ;;  %777 = vmatmul.bf16.gmra.mxu1 %v1869_v43 }
  0xb3   :  { %866 = vmatmul.bf16.gmra.mxu2 %v1869_v43  ;;  %955 = vmatmul.bf16.gmra.mxu3 %v1869_v43 }
  0xb4   :  { %1585 = vst [vmem:[#allocation9] sm:$0xff] %v1521_v48 }
  0xb6   :  { %v827_v51 = vpop.f32.mrf.mxu2  ;;  %v916_v53 = vpop.f32.mrf.mxu3 }
  0xb7   :  { %v1395_v52 = vadd.f32 %v2065_v49, %v827_v51  ;;  %v651_v54 = vpop.f32.mrf.mxu0  ;;  %v1396_v55 = vadd.f32 %v2067_v50, %v916_v53  ;;  %v740_v57 = vpop.f32.mrf.mxu1 }
  0xb8   :  { %v1397_v56 = vadd.f32 %v2059_v41, %v651_v54  ;;  %v1398_v58 = vadd.f32 %v2061_v42, %v740_v57 }
  0xb9   :  { %v1522_v59 = vpack.c.bf16 %v1396_v55, %v1395_v52 }
  0xba   :  { %v1523_v60 = vpack.c.bf16 %v1398_v58, %v1397_v56 }
  0xbb   :  { %1586 = vst [vmem:[#allocation9 + $0x8] sm:$0xff] %v1522_v59 }
  0xbc   :  { %1587 = vst [vmem:[#allocation9 + $0x10] sm:$0xff] %v1523_v60 }
  0xbe   :  { %v829_v61 = vpop.f32.mrf.mxu2  ;;  %v918_v0 = vpop.f32.mrf.mxu3 }
  0xbf   :  { %v1399_v63 = vadd.f32 %v2065_v49, %v829_v61  ;;  %v654_v1 = vpop.f32.mrf.mxu0  ;;  %v1400_v2 = vadd.f32 %v2067_v50, %v918_v0  ;;  %v743_v4 = vpop.f32.mrf.mxu1 }
  0xc0   :  { %v1401_v3 = vadd.f32 %v2059_v41, %v654_v1  ;;  %v1402_v5 = vadd.f32 %v2061_v42, %v743_v4  ;;  %v1873_v1 = vld [vmem:[#allocation3 + $0x60] sm:$0xff] }
  0xc1   :  { %v1524_v6 = vpack.c.bf16 %v1400_v2, %v1399_v63  ;;  %693 = vmatmul.bf16.gmra.mxu0 %v1870_v62 }
  0xc2   :  { %v1525_v7 = vpack.c.bf16 %v1402_v5, %v1401_v3  ;;  %782 = vmatmul.bf16.gmra.mxu1 %v1870_v62 }
  0xc3   :  { %871 = vmatmul.bf16.gmra.mxu2 %v1870_v62  ;;  %1588 = vst [vmem:[#allocation9 + $0x18] sm:$0xff] %v1524_v6  ;;  %960 = vmatmul.bf16.gmra.mxu3 %v1870_v62 }
  0xc4   :  { %1589 = vst [vmem:[#allocation9 + $0x20] sm:$0xff] %v1525_v7 }
  0xc6   :  { %v832_v8 = vpop.f32.mrf.mxu2  ;;  %v921_v10 = vpop.f32.mrf.mxu3 }
  0xc7   :  { %v1403_v9 = vadd.f32 %v2065_v49, %v832_v8  ;;  %v656_v11 = vpop.f32.mrf.mxu0  ;;  %v1404_v12 = vadd.f32 %v2067_v50, %v921_v10  ;;  %v745_v14 = vpop.f32.mrf.mxu1 }
  0xc8   :  { %v1405_v13 = vadd.f32 %v2059_v41, %v656_v11  ;;  %v1406_v15 = vadd.f32 %v2061_v42, %v745_v14 }
  0xc9   :  { %v1526_v16 = vpack.c.bf16 %v1404_v12, %v1403_v9 }
  0xca   :  { %v1527_v17 = vpack.c.bf16 %v1406_v15, %v1405_v13 }
  0xcb   :  { %1590 = vst [vmem:[#allocation9 + $0x28] sm:$0xff] %v1526_v16 }
  0xcc   :  { %1591 = vst [vmem:[#allocation9 + $0x30] sm:$0xff] %v1527_v17 }
  0xce   :  { %v834_v18 = vpop.f32.mrf.mxu2  ;;  %v923_v21 = vpop.f32.mrf.mxu3 }
  0xcf   :  { %v1407_v20 = vadd.f32 %v2065_v49, %v834_v18  ;;  %v659_v22 = vpop.f32.mrf.mxu0  ;;  %v1408_v23 = vadd.f32 %v2067_v50, %v923_v21  ;;  %v748_v25 = vpop.f32.mrf.mxu1 }
  0xd0   :  { %v1409_v24 = vadd.f32 %v2059_v41, %v659_v22  ;;  %v1410_v26 = vadd.f32 %v2061_v42, %v748_v25  ;;  %v1874_v22 = vld [vmem:[#allocation3 + $0x68] sm:$0xff] }
  0xd1   :  { %v1528_v27 = vpack.c.bf16 %v1408_v23, %v1407_v20  ;;  %698 = vmatmul.bf16.gmra.mxu0 %v1871_v19 }
  0xd2   :  { %v1529_v28 = vpack.c.bf16 %v1410_v26, %v1409_v24  ;;  %787 = vmatmul.bf16.gmra.mxu1 %v1871_v19 }
  0xd3   :  { %876 = vmatmul.bf16.gmra.mxu2 %v1871_v19  ;;  %1592 = vst [vmem:[#allocation9 + $0x38] sm:$0xff] %v1528_v27  ;;  %965 = vmatmul.bf16.gmra.mxu3 %v1871_v19 }
  0xd4   :  { %1593 = vst [vmem:[#allocation9 + $0x40] sm:$0xff] %v1529_v28 }
  0xd6   :  { %v837_v29 = vpop.f32.mrf.mxu2  ;;  %v926_v31 = vpop.f32.mrf.mxu3 }
  0xd7   :  { %v1411_v30 = vadd.f32 %v2065_v49, %v837_v29  ;;  %v661_v32 = vpop.f32.mrf.mxu0  ;;  %v1412_v33 = vadd.f32 %v2067_v50, %v926_v31  ;;  %v750_v35 = vpop.f32.mrf.mxu1 }
  0xd8   :  { %v1413_v34 = vadd.f32 %v2059_v41, %v661_v32  ;;  %v1414_v36 = vadd.f32 %v2061_v42, %v750_v35 }
  0xd9   :  { %v1530_v37 = vpack.c.bf16 %v1412_v33, %v1411_v30 }
  0xda   :  { %v1531_v38 = vpack.c.bf16 %v1414_v36, %v1413_v34 }
  0xdb   :  { %1594 = vst [vmem:[#allocation9 + $0x48] sm:$0xff] %v1530_v37 }
  0xdc   :  { %1595 = vst [vmem:[#allocation9 + $0x50] sm:$0xff] %v1531_v38 }
  0xde   :  { %v839_v39 = vpop.f32.mrf.mxu2  ;;  %v928_v44 = vpop.f32.mrf.mxu3 }
  0xdf   :  { %v1415_v43 = vadd.f32 %v2065_v49, %v839_v39  ;;  %v664_v45 = vpop.f32.mrf.mxu0  ;;  %v1416_v46 = vadd.f32 %v2067_v50, %v928_v44  ;;  %v753_v48 = vpop.f32.mrf.mxu1 }
  0xe0   :  { %v1417_v47 = vadd.f32 %v2059_v41, %v664_v45  ;;  %v1418_v51 = vadd.f32 %v2061_v42, %v753_v48  ;;  %v1875_v45 = vld [vmem:[#allocation3 + $0x70] sm:$0xff] }
  0xe1   :  { %v1532_v52 = vpack.c.bf16 %v1416_v46, %v1415_v43  ;;  %703 = vmatmul.bf16.gmra.mxu0 %v1872_v40 }
  0xe2   :  { %v1533_v53 = vpack.c.bf16 %v1418_v51, %v1417_v47  ;;  %792 = vmatmul.bf16.gmra.mxu1 %v1872_v40 }
  0xe3   :  { %881 = vmatmul.bf16.gmra.mxu2 %v1872_v40  ;;  %1596 = vst [vmem:[#allocation9 + $0x58] sm:$0xff] %v1532_v52  ;;  %970 = vmatmul.bf16.gmra.mxu3 %v1872_v40 }
  0xe4   :  { %1597 = vst [vmem:[#allocation9 + $0x60] sm:$0xff] %v1533_v53 }
  0xe6   :  { %v842_v54 = vpop.f32.mrf.mxu2  ;;  %v931_v56 = vpop.f32.mrf.mxu3 }
  0xe7   :  { %v1419_v55 = vadd.f32 %v2065_v49, %v842_v54  ;;  %v666_v57 = vpop.f32.mrf.mxu0  ;;  %v1420_v58 = vadd.f32 %v2067_v50, %v931_v56  ;;  %v755_v60 = vpop.f32.mrf.mxu1 }
  0xe8   :  { %v1421_v59 = vadd.f32 %v2059_v41, %v666_v57  ;;  %v1422_v61 = vadd.f32 %v2061_v42, %v755_v60 }
  0xe9   :  { %v1534_v62 = vpack.c.bf16 %v1420_v58, %v1419_v55 }
  0xea   :  { %v1535_v63 = vpack.c.bf16 %v1422_v61, %v1421_v59 }
  0xeb   :  { %1598 = vst [vmem:[#allocation9 + $0x68] sm:$0xff] %v1534_v62 }
  0xec   :  { %1599 = vst [vmem:[#allocation9 + $0x70] sm:$0xff] %v1535_v63 }
  0xee   :  { %v844_v0 = vpop.f32.mrf.mxu2  ;;  %v933_v3 = vpop.f32.mrf.mxu3 }
  0xef   :  { %v1423_v2 = vadd.f32 %v2065_v49, %v844_v0  ;;  %v669_v4 = vpop.f32.mrf.mxu0  ;;  %v1424_v5 = vadd.f32 %v2067_v50, %v933_v3  ;;  %v758_v7 = vpop.f32.mrf.mxu1 }
  0xf0   :  { %v1425_v6 = vadd.f32 %v2059_v41, %v669_v4  ;;  %v1426_v8 = vadd.f32 %v2061_v42, %v758_v7  ;;  %v1876_v4 = vld [vmem:[#allocation3 + $0x78] sm:$0xff] }
  0xf1   :  { %v1536_v9 = vpack.c.bf16 %v1424_v5, %v1423_v2  ;;  %708 = vmatmul.bf16.gmra.mxu0 %v1873_v1 }
  0xf2   :  { %v1537_v10 = vpack.c.bf16 %v1426_v8, %v1425_v6  ;;  %797 = vmatmul.bf16.gmra.mxu1 %v1873_v1 }
  0xf3   :  { %886 = vmatmul.bf16.gmra.mxu2 %v1873_v1  ;;  %1600 = vst [vmem:[#allocation9 + $0x78] sm:$0xff] %v1536_v9  ;;  %975 = vmatmul.bf16.gmra.mxu3 %v1873_v1 }
  0xf4   :  { %1601 = vst [vmem:[#allocation9 + $0x80] sm:$0xff] %v1537_v10 }
  0xf6   :  { %v847_v11 = vpop.f32.mrf.mxu2  ;;  %v936_v13 = vpop.f32.mrf.mxu3 }
  0xf7   :  { %v1427_v12 = vadd.f32 %v2065_v49, %v847_v11  ;;  %v671_v14 = vpop.f32.mrf.mxu0  ;;  %v1428_v15 = vadd.f32 %v2067_v50, %v936_v13  ;;  %v760_v17 = vpop.f32.mrf.mxu1 }
  0xf8   :  { %v1429_v16 = vadd.f32 %v2059_v41, %v671_v14  ;;  %v1430_v18 = vadd.f32 %v2061_v42, %v760_v17 }
  0xf9   :  { %v1538_v19 = vpack.c.bf16 %v1428_v15, %v1427_v12 }
  0xfa   :  { %v1539_v20 = vpack.c.bf16 %v1430_v18, %v1429_v16 }
  0xfb   :  { %1602 = vst [vmem:[#allocation9 + $0x88] sm:$0xff] %v1538_v19 }
  0xfc   :  { %1603 = vst [vmem:[#allocation9 + $0x90] sm:$0xff] %v1539_v20 }
  0xfe   :  { %v849_v21 = vpop.f32.mrf.mxu2  ;;  %v938_v24 = vpop.f32.mrf.mxu3 }
  0xff   :  { %v1431_v23 = vadd.f32 %v2065_v49, %v849_v21  ;;  %v674_v25 = vpop.f32.mrf.mxu0  ;;  %v1432_v26 = vadd.f32 %v2067_v50, %v938_v24  ;;  %v763_v28 = vpop.f32.mrf.mxu1 }
 0x100   :  { %v1433_v27 = vadd.f32 %v2059_v41, %v674_v25  ;;  %v1434_v29 = vadd.f32 %v2061_v42, %v763_v28 }
 0x101   :  { %v1540_v30 = vpack.c.bf16 %v1432_v26, %v1431_v23  ;;  %713 = vmatmul.bf16.gmra.mxu0 %v1874_v22 }
 0x102   :  { %v1541_v31 = vpack.c.bf16 %v1434_v29, %v1433_v27  ;;  %802 = vmatmul.bf16.gmra.mxu1 %v1874_v22 }
 0x103   :  { %891 = vmatmul.bf16.gmra.mxu2 %v1874_v22  ;;  %1604 = vst [vmem:[#allocation9 + $0x98] sm:$0xff] %v1540_v30  ;;  %980 = vmatmul.bf16.gmra.mxu3 %v1874_v22 }
 0x104   :  { %1605 = vst [vmem:[#allocation9 + $0xa0] sm:$0xff] %v1541_v31 }
 0x106   :  { %v852_v32 = vpop.f32.mrf.mxu2  ;;  %v941_v34 = vpop.f32.mrf.mxu3 }
 0x107   :  { %v1435_v33 = vadd.f32 %v2065_v49, %v852_v32  ;;  %v676_v35 = vpop.f32.mrf.mxu0  ;;  %v1436_v36 = vadd.f32 %v2067_v50, %v941_v34  ;;  %v765_v38 = vpop.f32.mrf.mxu1 }
 0x108   :  { %v1437_v37 = vadd.f32 %v2059_v41, %v676_v35  ;;  %v1438_v39 = vadd.f32 %v2061_v42, %v765_v38 }
 0x109   :  { %v1542_v40 = vpack.c.bf16 %v1436_v36, %v1435_v33 }
 0x10a   :  { %v1543_v43 = vpack.c.bf16 %v1438_v39, %v1437_v37 }
 0x10b   :  { %1606 = vst [vmem:[#allocation9 + $0xa8] sm:$0xff] %v1542_v40 }
 0x10c   :  { %1607 = vst [vmem:[#allocation9 + $0xb0] sm:$0xff] %v1543_v43 }
 0x10e   :  { %v854_v44 = vpop.f32.mrf.mxu2  ;;  %v943_v47 = vpop.f32.mrf.mxu3 }
 0x10f   :  { %v1439_v46 = vadd.f32 %v2065_v49, %v854_v44  ;;  %v679_v48 = vpop.f32.mrf.mxu0  ;;  %v1440_v51 = vadd.f32 %v2067_v50, %v943_v47  ;;  %v768_v53 = vpop.f32.mrf.mxu1 }
 0x110   :  { %v1441_v52 = vadd.f32 %v2059_v41, %v679_v48  ;;  %v1442_v54 = vadd.f32 %v2061_v42, %v768_v53 }
 0x111   :  { %v1544_v55 = vpack.c.bf16 %v1440_v51, %v1439_v46  ;;  %718 = vmatmul.bf16.gmra.mxu0 %v1875_v45 }
 0x112   :  { %v1545_v56 = vpack.c.bf16 %v1442_v54, %v1441_v52  ;;  %807 = vmatmul.bf16.gmra.mxu1 %v1875_v45 }
 0x113   :  { %896 = vmatmul.bf16.gmra.mxu2 %v1875_v45  ;;  %1608 = vst [vmem:[#allocation9 + $0xb8] sm:$0xff] %v1544_v55  ;;  %985 = vmatmul.bf16.gmra.mxu3 %v1875_v45 }
 0x114   :  { %1609 = vst [vmem:[#allocation9 + $0xc0] sm:$0xff] %v1545_v56 }
 0x116   :  { %v857_v57 = vpop.f32.mrf.mxu2  ;;  %v946_v59 = vpop.f32.mrf.mxu3 }
 0x117   :  { %v1443_v58 = vadd.f32 %v2065_v49, %v857_v57  ;;  %v681_v60 = vpop.f32.mrf.mxu0  ;;  %v1444_v61 = vadd.f32 %v2067_v50, %v946_v59  ;;  %v770_v63 = vpop.f32.mrf.mxu1 }
 0x118   :  { %v1445_v62 = vadd.f32 %v2059_v41, %v681_v60  ;;  %v1446_v0 = vadd.f32 %v2061_v42, %v770_v63 }
 0x119   :  { %v1546_v1 = vpack.c.bf16 %v1444_v61, %v1443_v58 }
 0x11a   :  { %v1547_v2 = vpack.c.bf16 %v1446_v0, %v1445_v62 }
 0x11b   :  { %1610 = vst [vmem:[#allocation9 + $0xc8] sm:$0xff] %v1546_v1 }
 0x11c   :  { %1611 = vst [vmem:[#allocation9 + $0xd0] sm:$0xff] %v1547_v2 }
 0x11e   :  { %v859_v3 = vpop.f32.mrf.mxu2  ;;  %v948_v6 = vpop.f32.mrf.mxu3 }
 0x11f   :  { %v1447_v5 = vadd.f32 %v2065_v49, %v859_v3  ;;  %v684_v7 = vpop.f32.mrf.mxu0  ;;  %v1448_v8 = vadd.f32 %v2067_v50, %v948_v6  ;;  %v773_v10 = vpop.f32.mrf.mxu1 }
 0x120   :  { %v1449_v9 = vadd.f32 %v2059_v41, %v684_v7  ;;  %v1450_v11 = vadd.f32 %v2061_v42, %v773_v10 }
 0x121   :  { %v1548_v12 = vpack.c.bf16 %v1448_v8, %v1447_v5  ;;  %723 = vmatmul.bf16.gmra.mxu0 %v1876_v4 }
 0x122   :  { %v1549_v13 = vpack.c.bf16 %v1450_v11, %v1449_v9  ;;  %812 = vmatmul.bf16.gmra.mxu1 %v1876_v4 }
 0x123   :  { %901 = vmatmul.bf16.gmra.mxu2 %v1876_v4  ;;  %1612 = vst [vmem:[#allocation9 + $0xd8] sm:$0xff] %v1548_v12  ;;  %990 = vmatmul.bf16.gmra.mxu3 %v1876_v4 }
 0x124   :  { %1613 = vst [vmem:[#allocation9 + $0xe0] sm:$0xff] %v1549_v13 }
 0x126   :  { %v862_v14 = vpop.f32.mrf.mxu2  ;;  %v951_v16 = vpop.f32.mrf.mxu3 }
 0x127   :  { %v1451_v15 = vadd.f32 %v2065_v49, %v862_v14  ;;  %v686_v17 = vpop.f32.mrf.mxu0  ;;  %v1452_v18 = vadd.f32 %v2067_v50, %v951_v16  ;;  %v775_v20 = vpop.f32.mrf.mxu1 }
 0x128   :  { %v1453_v19 = vadd.f32 %v2059_v41, %v686_v17  ;;  %v1454_v21 = vadd.f32 %v2061_v42, %v775_v20 }
 0x129   :  { %v1550_v22 = vpack.c.bf16 %v1452_v18, %v1451_v15 }
 0x12a   :  { %v1551_v23 = vpack.c.bf16 %v1454_v21, %v1453_v19 }
 0x12b   :  { %1614 = vst [vmem:[#allocation9 + $0xe8] sm:$0xff] %v1550_v22 }
 0x12c   :  { %1615 = vst [vmem:[#allocation9 + $0xf0] sm:$0xff] %v1551_v23 }
 0x12e   :  { %v864_v24 = vpop.f32.mrf.mxu2  ;;  %v953_v26 = vpop.f32.mrf.mxu3 }
 0x12f   :  { %v1455_v25 = vadd.f32 %v2065_v49, %v864_v24  ;;  %v689_v27 = vpop.f32.mrf.mxu0  ;;  %v1456_v28 = vadd.f32 %v2067_v50, %v953_v26  ;;  %v778_v30 = vpop.f32.mrf.mxu1 }
 0x130   :  { %v1457_v29 = vadd.f32 %v2059_v41, %v689_v27  ;;  %v1458_v31 = vadd.f32 %v2061_v42, %v778_v30 }
 0x131   :  { %v1552_v32 = vpack.c.bf16 %v1456_v28, %v1455_v25 }
 0x132   :  { %v1553_v33 = vpack.c.bf16 %v1458_v31, %v1457_v29 }
 0x133   :  { %1616 = vst [vmem:[#allocation9 + $0xf8] sm:$0xff] %v1552_v32 }
 0x134   :  { %1617 = vst [vmem:[#allocation9 + $0x100] sm:$0xff] %v1553_v33 }
 0x136   :  { %v867_v34 = vpop.f32.mrf.mxu2  ;;  %v956_v36 = vpop.f32.mrf.mxu3 }
 0x137   :  { %v1459_v35 = vadd.f32 %v2065_v49, %v867_v34  ;;  %v691_v37 = vpop.f32.mrf.mxu0  ;;  %v1460_v38 = vadd.f32 %v2067_v50, %v956_v36  ;;  %v780_v40 = vpop.f32.mrf.mxu1 }
 0x138   :  { %v1461_v39 = vadd.f32 %v2059_v41, %v691_v37  ;;  %v1462_v43 = vadd.f32 %v2061_v42, %v780_v40 }
 0x139   :  { %v1554_v44 = vpack.c.bf16 %v1460_v38, %v1459_v35 }
 0x13a   :  { %v1555_v45 = vpack.c.bf16 %v1462_v43, %v1461_v39 }
 0x13b   :  { %1618 = vst [vmem:[#allocation9 + $0x108] sm:$0xff] %v1554_v44 }
 0x13c   :  { %1619 = vst [vmem:[#allocation9 + $0x110] sm:$0xff] %v1555_v45 }
 0x13e   :  { %v869_v46 = vpop.f32.mrf.mxu2  ;;  %v958_v48 = vpop.f32.mrf.mxu3 }
 0x13f   :  { %v1463_v47 = vadd.f32 %v2065_v49, %v869_v46  ;;  %v694_v51 = vpop.f32.mrf.mxu0  ;;  %v1464_v52 = vadd.f32 %v2067_v50, %v958_v48  ;;  %v783_v54 = vpop.f32.mrf.mxu1 }
 0x140   :  { %v1465_v53 = vadd.f32 %v2059_v41, %v694_v51  ;;  %v1466_v55 = vadd.f32 %v2061_v42, %v783_v54 }
 0x141   :  { %v1556_v56 = vpack.c.bf16 %v1464_v52, %v1463_v47 }
 0x142   :  { %v1557_v57 = vpack.c.bf16 %v1466_v55, %v1465_v53 }
 0x143   :  { %1620 = vst [vmem:[#allocation9 + $0x118] sm:$0xff] %v1556_v56 }
 0x144   :  { %1621 = vst [vmem:[#allocation9 + $0x120] sm:$0xff] %v1557_v57 }
 0x146   :  { %v872_v58 = vpop.f32.mrf.mxu2  ;;  %v961_v60 = vpop.f32.mrf.mxu3 }
 0x147   :  { %v1467_v59 = vadd.f32 %v2065_v49, %v872_v58  ;;  %v696_v61 = vpop.f32.mrf.mxu0  ;;  %v1468_v62 = vadd.f32 %v2067_v50, %v961_v60  ;;  %v785_v0 = vpop.f32.mrf.mxu1 }
 0x148   :  { %v1469_v63 = vadd.f32 %v2059_v41, %v696_v61  ;;  %v1470_v1 = vadd.f32 %v2061_v42, %v785_v0 }
 0x149   :  { %v1558_v2 = vpack.c.bf16 %v1468_v62, %v1467_v59 }
 0x14a   :  { %v1559_v3 = vpack.c.bf16 %v1470_v1, %v1469_v63 }
 0x14b   :  { %1622 = vst [vmem:[#allocation9 + $0x128] sm:$0xff] %v1558_v2 }
 0x14c   :  { %1623 = vst [vmem:[#allocation9 + $0x130] sm:$0xff] %v1559_v3 }
 0x14e   :  { %v874_v4 = vpop.f32.mrf.mxu2  ;;  %v963_v6 = vpop.f32.mrf.mxu3 }
 0x14f   :  { %v1471_v5 = vadd.f32 %v2065_v49, %v874_v4  ;;  %v699_v7 = vpop.f32.mrf.mxu0  ;;  %v1472_v8 = vadd.f32 %v2067_v50, %v963_v6  ;;  %v788_v10 = vpop.f32.mrf.mxu1 }
 0x150   :  { %v1473_v9 = vadd.f32 %v2059_v41, %v699_v7  ;;  %v1474_v11 = vadd.f32 %v2061_v42, %v788_v10 }
 0x151   :  { %v1560_v12 = vpack.c.bf16 %v1472_v8, %v1471_v5 }
 0x152   :  { %v1561_v13 = vpack.c.bf16 %v1474_v11, %v1473_v9 }
 0x153   :  { %1624 = vst [vmem:[#allocation9 + $0x138] sm:$0xff] %v1560_v12 }
 0x154   :  { %1625 = vst [vmem:[#allocation9 + $0x140] sm:$0xff] %v1561_v13 }
 0x156   :  { %v877_v14 = vpop.f32.mrf.mxu2  ;;  %v966_v16 = vpop.f32.mrf.mxu3 }
 0x157   :  { %v1475_v15 = vadd.f32 %v2065_v49, %v877_v14  ;;  %v701_v17 = vpop.f32.mrf.mxu0  ;;  %v1476_v18 = vadd.f32 %v2067_v50, %v966_v16  ;;  %v790_v20 = vpop.f32.mrf.mxu1 }
 0x158   :  { %v1477_v19 = vadd.f32 %v2059_v41, %v701_v17  ;;  %v1478_v21 = vadd.f32 %v2061_v42, %v790_v20 }
 0x159   :  { %v1562_v22 = vpack.c.bf16 %v1476_v18, %v1475_v15 }
 0x15a   :  { %v1563_v23 = vpack.c.bf16 %v1478_v21, %v1477_v19 }
 0x15b   :  { %1626 = vst [vmem:[#allocation9 + $0x148] sm:$0xff] %v1562_v22 }
 0x15c   :  { %1627 = vst [vmem:[#allocation9 + $0x150] sm:$0xff] %v1563_v23 }
 0x15e   :  { %v879_v24 = vpop.f32.mrf.mxu2  ;;  %v968_v26 = vpop.f32.mrf.mxu3 }
 0x15f   :  { %v1479_v25 = vadd.f32 %v2065_v49, %v879_v24  ;;  %v704_v27 = vpop.f32.mrf.mxu0  ;;  %v1480_v28 = vadd.f32 %v2067_v50, %v968_v26  ;;  %v793_v30 = vpop.f32.mrf.mxu1 }
 0x160   :  { %v1481_v29 = vadd.f32 %v2059_v41, %v704_v27  ;;  %v1482_v31 = vadd.f32 %v2061_v42, %v793_v30 }
 0x161   :  { %v1564_v32 = vpack.c.bf16 %v1480_v28, %v1479_v25 }
 0x162   :  { %v1565_v33 = vpack.c.bf16 %v1482_v31, %v1481_v29 }
 0x163   :  { %1628 = vst [vmem:[#allocation9 + $0x158] sm:$0xff] %v1564_v32 }
 0x164   :  { %1629 = vst [vmem:[#allocation9 + $0x160] sm:$0xff] %v1565_v33 }
 0x166   :  { %v882_v34 = vpop.f32.mrf.mxu2  ;;  %v971_v36 = vpop.f32.mrf.mxu3 }
 0x167   :  { %v1483_v35 = vadd.f32 %v2065_v49, %v882_v34  ;;  %v706_v37 = vpop.f32.mrf.mxu0  ;;  %v1484_v38 = vadd.f32 %v2067_v50, %v971_v36  ;;  %v795_v40 = vpop.f32.mrf.mxu1 }
 0x168   :  { %v1485_v39 = vadd.f32 %v2059_v41, %v706_v37  ;;  %v1486_v43 = vadd.f32 %v2061_v42, %v795_v40 }
 0x169   :  { %v1566_v44 = vpack.c.bf16 %v1484_v38, %v1483_v35 }
 0x16a   :  { %v1567_v45 = vpack.c.bf16 %v1486_v43, %v1485_v39 }
 0x16b   :  { %1630 = vst [vmem:[#allocation9 + $0x168] sm:$0xff] %v1566_v44 }
 0x16c   :  { %1631 = vst [vmem:[#allocation9 + $0x170] sm:$0xff] %v1567_v45 }
 0x16e   :  { %v884_v46 = vpop.f32.mrf.mxu2  ;;  %v973_v48 = vpop.f32.mrf.mxu3 }
 0x16f   :  { %v1487_v47 = vadd.f32 %v2065_v49, %v884_v46  ;;  %v709_v51 = vpop.f32.mrf.mxu0  ;;  %v1488_v52 = vadd.f32 %v2067_v50, %v973_v48  ;;  %v798_v54 = vpop.f32.mrf.mxu1 }
 0x170   :  { %v1489_v53 = vadd.f32 %v2059_v41, %v709_v51  ;;  %v1490_v55 = vadd.f32 %v2061_v42, %v798_v54 }
 0x171   :  { %v1568_v56 = vpack.c.bf16 %v1488_v52, %v1487_v47 }
 0x172   :  { %v1569_v57 = vpack.c.bf16 %v1490_v55, %v1489_v53 }
 0x173   :  { %1632 = vst [vmem:[#allocation9 + $0x178] sm:$0xff] %v1568_v56 }
 0x174   :  { %1633 = vst [vmem:[#allocation9 + $0x180] sm:$0xff] %v1569_v57 }
 0x176   :  { %v887_v58 = vpop.f32.mrf.mxu2  ;;  %v976_v60 = vpop.f32.mrf.mxu3 }
 0x177   :  { %v1491_v59 = vadd.f32 %v2065_v49, %v887_v58  ;;  %v711_v61 = vpop.f32.mrf.mxu0  ;;  %v1492_v62 = vadd.f32 %v2067_v50, %v976_v60  ;;  %v800_v0 = vpop.f32.mrf.mxu1 }
 0x178   :  { %v1493_v63 = vadd.f32 %v2059_v41, %v711_v61  ;;  %v1494_v1 = vadd.f32 %v2061_v42, %v800_v0 }
 0x179   :  { %v1570_v2 = vpack.c.bf16 %v1492_v62, %v1491_v59 }
 0x17a   :  { %v1571_v3 = vpack.c.bf16 %v1494_v1, %v1493_v63 }
 0x17b   :  { %1634 = vst [vmem:[#allocation9 + $0x188] sm:$0xff] %v1570_v2 }
 0x17c   :  { %1635 = vst [vmem:[#allocation9 + $0x190] sm:$0xff] %v1571_v3 }
 0x17e   :  { %v889_v4 = vpop.f32.mrf.mxu2  ;;  %v978_v6 = vpop.f32.mrf.mxu3 }
 0x17f   :  { %v1495_v5 = vadd.f32 %v2065_v49, %v889_v4  ;;  %v714_v7 = vpop.f32.mrf.mxu0  ;;  %v1496_v8 = vadd.f32 %v2067_v50, %v978_v6  ;;  %v803_v10 = vpop.f32.mrf.mxu1 }
 0x180   :  { %v1497_v9 = vadd.f32 %v2059_v41, %v714_v7  ;;  %v1498_v11 = vadd.f32 %v2061_v42, %v803_v10 }
 0x181   :  { %v1572_v12 = vpack.c.bf16 %v1496_v8, %v1495_v5 }
 0x182   :  { %v1573_v13 = vpack.c.bf16 %v1498_v11, %v1497_v9 }
 0x183   :  { %1636 = vst [vmem:[#allocation9 + $0x198] sm:$0xff] %v1572_v12 }
 0x184   :  { %1637 = vst [vmem:[#allocation9 + $0x1a0] sm:$0xff] %v1573_v13 }
 0x186   :  { %v892_v14 = vpop.f32.mrf.mxu2  ;;  %v981_v16 = vpop.f32.mrf.mxu3 }
 0x187   :  { %v1499_v15 = vadd.f32 %v2065_v49, %v892_v14  ;;  %v716_v17 = vpop.f32.mrf.mxu0  ;;  %v1500_v18 = vadd.f32 %v2067_v50, %v981_v16  ;;  %v805_v20 = vpop.f32.mrf.mxu1 }
 0x188   :  { %v1501_v19 = vadd.f32 %v2059_v41, %v716_v17  ;;  %v1502_v21 = vadd.f32 %v2061_v42, %v805_v20 }
 0x189   :  { %v1574_v22 = vpack.c.bf16 %v1500_v18, %v1499_v15 }
 0x18a   :  { %v1575_v23 = vpack.c.bf16 %v1502_v21, %v1501_v19 }
 0x18b   :  { %1638 = vst [vmem:[#allocation9 + $0x1a8] sm:$0xff] %v1574_v22 }
 0x18c   :  { %1639 = vst [vmem:[#allocation9 + $0x1b0] sm:$0xff] %v1575_v23 }
 0x18e   :  { %v894_v24 = vpop.f32.mrf.mxu2  ;;  %v983_v26 = vpop.f32.mrf.mxu3 }
 0x18f   :  { %v1503_v25 = vadd.f32 %v2065_v49, %v894_v24  ;;  %v719_v27 = vpop.f32.mrf.mxu0  ;;  %v1504_v28 = vadd.f32 %v2067_v50, %v983_v26  ;;  %v808_v30 = vpop.f32.mrf.mxu1 }
 0x190   :  { %v1505_v29 = vadd.f32 %v2059_v41, %v719_v27  ;;  %v1506_v31 = vadd.f32 %v2061_v42, %v808_v30 }
 0x191   :  { %v1576_v32 = vpack.c.bf16 %v1504_v28, %v1503_v25 }
 0x192   :  { %v1577_v33 = vpack.c.bf16 %v1506_v31, %v1505_v29 }
 0x193   :  { %1640 = vst [vmem:[#allocation9 + $0x1b8] sm:$0xff] %v1576_v32 }
 0x194   :  { %1641 = vst [vmem:[#allocation9 + $0x1c0] sm:$0xff] %v1577_v33 }
 0x196   :  { %v897_v34 = vpop.f32.mrf.mxu2  ;;  %v986_v36 = vpop.f32.mrf.mxu3 }
 0x197   :  { %v1507_v35 = vadd.f32 %v2065_v49, %v897_v34  ;;  %v721_v37 = vpop.f32.mrf.mxu0  ;;  %v1508_v38 = vadd.f32 %v2067_v50, %v986_v36  ;;  %v810_v40 = vpop.f32.mrf.mxu1 }
 0x198   :  { %v1509_v39 = vadd.f32 %v2059_v41, %v721_v37  ;;  %v1510_v43 = vadd.f32 %v2061_v42, %v810_v40 }
 0x199   :  { %v1578_v44 = vpack.c.bf16 %v1508_v38, %v1507_v35 }
 0x19a   :  { %v1579_v45 = vpack.c.bf16 %v1510_v43, %v1509_v39 }
 0x19b   :  { %1642 = vst [vmem:[#allocation9 + $0x1c8] sm:$0xff] %v1578_v44 }
 0x19c   :  { %1643 = vst [vmem:[#allocation9 + $0x1d0] sm:$0xff] %v1579_v45 }
 0x19e   :  { %v899_v46 = vpop.f32.mrf.mxu2  ;;  %v988_v48 = vpop.f32.mrf.mxu3 }
 0x19f   :  { %v1511_v47 = vadd.f32 %v2065_v49, %v899_v46  ;;  %v724_v51 = vpop.f32.mrf.mxu0  ;;  %v1512_v52 = vadd.f32 %v2067_v50, %v988_v48  ;;  %v813_v54 = vpop.f32.mrf.mxu1 }
 0x1a0   :  { %v1513_v53 = vadd.f32 %v2059_v41, %v724_v51  ;;  %v1514_v55 = vadd.f32 %v2061_v42, %v813_v54 }
 0x1a1   :  { %v1580_v56 = vpack.c.bf16 %v1512_v52, %v1511_v47 }
 0x1a2   :  { %v1581_v57 = vpack.c.bf16 %v1514_v55, %v1513_v53 }
 0x1a3   :  { %1644 = vst [vmem:[#allocation9 + $0x1d8] sm:$0xff] %v1580_v56 }
 0x1a4   :  { %1645 = vst [vmem:[#allocation9 + $0x1e0] sm:$0xff] %v1581_v57 }
 0x1a6   :  { %v902_v58 = vpop.f32.mrf.mxu2  ;;  %v991_v60 = vpop.f32.mrf.mxu3 }
 0x1a7   :  { %v1515_v59 = vadd.f32 %v2065_v49, %v902_v58  ;;  %v726_v61 = vpop.f32.mrf.mxu0  ;;  %v1516_v62 = vadd.f32 %v2067_v50, %v991_v60  ;;  %v815_v0 = vpop.f32.mrf.mxu1 }
 0x1a8   :  { %v1517_v63 = vadd.f32 %v2059_v41, %v726_v61  ;;  %v1518_v1 = vadd.f32 %v2061_v42, %v815_v0 }
 0x1a9   :  { %v1582_v2 = vpack.c.bf16 %v1516_v62, %v1515_v59 }
 0x1aa   :  { %v1583_v3 = vpack.c.bf16 %v1518_v1, %v1517_v63 }
 0x1ab   :  { %1646 = vst [vmem:[#allocation9 + $0x1e8] sm:$0xff] %v1582_v2 }
 0x1ac   :  { %1647 = vst [vmem:[#allocation9 + $0x1f0] sm:$0xff] %v1583_v3 }
 0x1ae   :  { %v904_v4 = vpop.f32.mrf.mxu2  ;;  %v993_v6 = vpop.f32.mrf.mxu3 }
 0x1af   :  { %v1519_v5 = vadd.f32 %v2065_v49, %v904_v4  ;;  %v1520_v7 = vadd.f32 %v2067_v50, %v993_v6 }
 0x1b1   :  { %v1584_v41 = vpack.c.bf16 %v1520_v7, %v1519_v5 }
 0x1b3   :  { %1648 = vst [vmem:[#allocation9 + $0x1f8] sm:$0xff] %v1584_v41 }
 0x1b4   :  { %1661 = dma.vmem_to_hbm [thread:$0]  %s1654_s29, 8192, %s1656_s5, [#allocation5], %s2020_s20, %s2020_s20, %s2021_s21  }
 0x1b5   :  { %2017 = dma.done.wait [#allocation5], 8192  }
 0x1b6   :  { %2018 = vsyncadd [#allocation5], 4294959104 }
 0x1b7   :  { %1666 = vsyncpa [#allocation4], 1 }
 0x1b8   :  { %1667 = vsyncpa [#allocation7], 1 }
 0x1b9   :  { %1668 = vsyncpa [#allocation5], 1 }

</bundles_post_ra>
